<compile_context>
chip_gen: v6e
topology: v6e:2x2x1
jax: 0.10.0
libtpu: 0.0.40
codegen_flags: <defaults>
</compile_context>

<pallas_src>
import functools

import jax
import jax.numpy as jnp
from jax import lax
from jax.experimental import pallas as pl
from jax.experimental.pallas import tpu as pltpu


def _difficulty_kernel(x_ref, w_ref, y_ref, o_ref, acc_ref, *, err_scale, out_scale):
    """One (class-tile ci, batch-tile k) grid step.

    grid axis 0 (ci): "parallel" over class tiles (independent partial sums).
    grid axis 1 (k):  "arbitrary" reduction over batch tiles, accumulated in
                      the [tc, D] f32 VMEM scratch `acc_ref`.
    """
    k = pl.program_id(1)

    @pl.when(k == 0)
    def _init():
        acc_ref[...] = jnp.zeros_like(acc_ref)

    x = x_ref[...]                                    # [tn, D]  (input dtype)
    w = w_ref[...]                                    # [tc, D]

    # logits tile = X_tile @ W_tile.T (contract over D), f32 MXU accumulation.
    logits = lax.dot_general(
        x, w, (((1,), (1,)), ((), ())), preferred_element_type=jnp.float32
    )                                                 # [tn, tc]

    # Apply the 2/(N*C) mean-MSE scale *before* the second matmul so the f32
    # accumulator magnitudes stay bounded even for very large N.
    err = (logits - y_ref[...].astype(jnp.float32)) * err_scale

    # Gradient partial: err.T @ X_tile (contract over the batch tile). Both
    # matmuls feed the MXU with transposed operands directly (no XLU
    # transpose needed for these contraction layouts).
    acc_ref[...] += lax.dot_general(
        err.astype(x.dtype), x, (((0,), (0,)), ((), ())),
        preferred_element_type=jnp.float32,
    )                                                 # [tc, D]

    @pl.when(k == pl.num_programs(1) - 1)
    def _finalize():
        g = acc_ref[...]
        val = out_scale * jnp.sum(g * g)              # partial for this c-tile
        # Lane-padded (1, 1, 128) slab instead of a masked scalar store.
        o_ref[...] = jnp.full(o_ref.shape, val, o_ref.dtype)


def _vmem_capacity_bytes():
    """Per-core VMEM capacity; conservative v7x value if the query fails."""
    try:
        info = pltpu.get_tpu_info()
        cap = getattr(info, "vmem_capacity_bytes", None)
        if cap:
            return int(cap)
    except Exception:
        pass
    return 64 * 1024 * 1024


def _tile_candidates(total, granularities):
    """Valid tile sizes for one dim: the full extent plus every divisor of
    `total` that is a multiple of one of `granularities` (descending)."""
    cands = {total}
    for g in granularities:
        k = total // g
        while k >= 1:
            t = k * g
            if t < total and total % t == 0:
                cands.add(t)
            k -= 1
    return sorted(cands, reverse=True)


def _choose_tiles(n, d, c, x_itemsize, y_itemsize, budget_bytes):
    """VMEM/dtype-aware tile selection.

    Preference order:
      1. Largest class tile (ideally tc == C, so X is streamed from HBM once)
         for which a batch tile tn >= min(512, N) still fits the budget.
      2. Otherwise the largest class tile that fits at all.
    """
    tc_cands = _tile_candidates(c, (256, 128))      # Y lane dim: 128-mult or full
    tn_cands = _tile_candidates(n, (256, 128, 8))   # sublane dim: 8-mult or full
    tn_pref = min(512, n)

    def footprint(tn, tc):
        x_bytes = 2 * tn * d * x_itemsize           # double-buffered X tile
        w_bytes = 2 * tc * d * x_itemsize           # W (counted double-buffered)
        y_bytes = 2 * tn * tc * y_itemsize          # double-buffered Y tile
        acc_bytes = tc * d * 4                      # f32 gradient accumulator
        out_bytes = 2 * 1 * 128 * 4                 # lane-padded partials
        return x_bytes + w_bytes + y_bytes + acc_bytes + out_bytes

    best_pref = None
    best_any = None
    for tc in tc_cands:
        fits = [tn for tn in tn_cands if footprint(tn, tc) <= budget_bytes]
        if not fits:
            continue
        tn = max(fits)
        if best_any is None:
            best_any = (tn, tc)
        if tn >= tn_pref:
            best_pref = (tn, tc)
            break
    tn, tc = best_pref or best_any or (min(tn_cands), min(tc_cands))
    return tn, tc, footprint(tn, tc)


def example_difficulty(x, w, y, lr, *, vmem_budget_bytes=None):
    """x: [N, D], w: [C, D] (student weights), y: [N, C] -> scalar f32.

    Computes lr**2 * || d/dW mean((X @ W.T - Y)**2) ||_F**2.
    """
    n, d = x.shape
    c, _ = w.shape
    assert y.shape == (n, c), (y.shape, n, c)

    x_isz = jnp.dtype(x.dtype).itemsize
    y_isz = jnp.dtype(y.dtype).itemsize

    cap = _vmem_capacity_bytes()
    budget = int(vmem_budget_bytes) if vmem_budget_bytes is not None else (cap * 3) // 4
    tn, tc, foot = _choose_tiles(n, d, c, x_isz, y_isz, budget)
    num_n = n // tn
    num_c = c // tc

    # Scoped VMEM limit: footprint + headroom, capped below physical capacity
    # (leaves room for compiler scratch / pipeline bookkeeping on v7x).
    vmem_limit = max(foot + (4 << 20), 16 << 20)
    vmem_limit = min(vmem_limit, (cap * 7) // 8)
    vmem_limit = max(vmem_limit, foot + (2 << 20))

    kernel = functools.partial(
        _difficulty_kernel,
        err_scale=2.0 / (n * c),        # mean-MSE gradient scale (applied to err)
        out_scale=float(lr) ** 2,       # lr**2 folded into the final scalar
    )

    def call(w_spec):
        return pl.pallas_call(
            kernel,
            out_shape=jax.ShapeDtypeStruct((num_c, 1, 128), jnp.float32),
            grid_spec=pltpu.PrefetchScalarGridSpec(
                num_scalar_prefetch=0,
                grid=(num_c, num_n),
                in_specs=[
                    pl.BlockSpec((tn, d), lambda ci, k: (k, 0)),     # X tile
                    w_spec,                                           # W tile
                    pl.BlockSpec((tn, tc), lambda ci, k: (k, ci)),   # Y tile
                ],
                out_specs=pl.BlockSpec((1, 1, 128), lambda ci, k: (ci, 0, 0)),
                scratch_shapes=[pltpu.VMEM((tc, d), jnp.float32)],   # grad accumulator
            ),
            compiler_params=pltpu.CompilerParams(
                dimension_semantics=("parallel", "arbitrary"),
                vmem_limit_bytes=int(vmem_limit),
            ),
        )(x, w, y)

    try:
        # W's block index (ci, 0) never changes along the k reduction axis, so
        # the default double buffer is dead weight: single-buffer it.
        partials = call(
            pl.BlockSpec((tc, d), lambda ci, k: (ci, 0), pipeline_mode=pl.Buffered(1))
        )
    except Exception:  # Fallback if this Pallas build rejects 1-deep buffering.
        partials = call(pl.BlockSpec((tc, d), lambda ci, k: (ci, 0)))

    return jnp.sum(partials[:, 0, 0])


def _reference(x, w, y, lr):
    f32 = jnp.float32
    xf, wf, yf = x.astype(f32), w.astype(f32), y.astype(f32)
    n, c = yf.shape
    logits = jnp.einsum("nd,cd->nc", xf, wf, precision=lax.Precision.HIGHEST)
    err = logits - yf
    grad = (2.0 / (n * c)) * jnp.einsum(
        "nc,nd->cd", err, xf, precision=lax.Precision.HIGHEST
    )
    return (lr ** 2) * jnp.sum(grad * grad)


if __name__ == "__main__":
    lr = 0.01

    # --- small demo consistent with the module (batch=8, hidden=32, classes=4) ---
    kx, kw, ky = jax.random.split(jax.random.PRNGKey(0), 3)
    N, D, C = 8, 32, 4
    x = jax.random.normal(kx, (N, D), dtype=jnp.float32)
    w = 0.1 * jax.random.normal(kw, (C, D), dtype=jnp.float32)   # "student" weights
    labels = jax.random.randint(ky, (N,), 0, C)
    y = jax.nn.one_hot(labels, C, dtype=jnp.float32)

    out = example_difficulty(x, w, y, lr)
    jax.block_until_ready(out)
    ref = _reference(x, w, y, lr)
    assert jnp.allclose(out, ref, rtol=1e-4, atol=1e-9), (out, ref)

    # --- medium case: full-extent tiles (tc == C -> single pass over X) ---
    k2x, k2w, k2y = jax.random.split(jax.random.PRNGKey(1), 3)
    N2, D2, C2 = 1024, 256, 384
    x2 = jax.random.normal(k2x, (N2, D2), dtype=jnp.float32)
    w2 = 0.05 * jax.random.normal(k2w, (C2, D2), dtype=jnp.float32)
    y2 = jax.random.normal(k2y, (N2, C2), dtype=jnp.float32)

    out2 = example_difficulty(x2, w2, y2, lr)
    jax.block_until_ready(out2)
    ref2 = _reference(x2, w2, y2, lr)
    assert jnp.allclose(out2, ref2, rtol=1e-3, atol=1e-12), (out2, ref2)

    # --- same problem with an artificially tight VMEM budget: exercises the
    #     multi-tile grid (num_c > 1, num_n > 1) and accumulator init/finalize ---
    out3 = example_difficulty(x2, w2, y2, lr, vmem_budget_bytes=2 * 1024 * 1024)
    jax.block_until_ready(out3)
    assert jnp.allclose(out3, ref2, rtol=1e-3, atol=1e-12), (out3, ref2)

    print("KERNEL_OK")
</pallas_src>

<mosaic_0001>
module attributes {stable_mosaic.version = 11 : i64} {
  func.func @_difficulty_kernel(%arg0: i32, %arg1: i32, %arg2: memref<8x32xf32, #tpu.memory_space<vmem>>, %arg3: memref<4x32xf32, #tpu.memory_space<vmem>>, %arg4: memref<8x4xf32, #tpu.memory_space<vmem>>, %arg5: memref<1x1x128xf32, #tpu.memory_space<vmem>>, %arg6: memref<4x32xf32, #tpu.memory_space<vmem>>) attributes {dimension_semantics = [#tpu.dimension_semantics<parallel>, #tpu.dimension_semantics<arbitrary>], iteration_bounds = array<i64: 1, 1>, scalar_prefetch = 0 : i64, scratch_operands = 1 : i64, tpu.core_type = #tpu.core_type<tc>, window_params = [{transform_indices = @transform_0, window_bounds = array<i64: 8, 32>}, {pipeline_mode = #tpu.pipeline_mode<synchronous>, transform_indices = @transform_1, window_bounds = array<i64: 4, 32>}, {transform_indices = @transform_2, window_bounds = array<i64: 8, 4>}, {transform_indices = @transform_3, window_bounds = array<i64: 1, 1, 128>}]} {
    %c0_i32 = arith.constant 0 : i32
    %0 = arith.cmpi eq, %arg1, %c0_i32 : i32
    %1 = arith.extui %0 : i1 to i32
    %c0_i32_0 = arith.constant 0 : i32
    %2 = arith.cmpi ne, %1, %c0_i32_0 : i32
    scf.if %2 {
      %cst_14 = arith.constant 0.000000e+00 : f32
      %17 = vector.broadcast %cst_14 : f32 to vector<4x32xf32>
      %c0_15 = arith.constant 0 : index
      %c0_16 = arith.constant 0 : index
      %18 = vector.load %arg6[%c0_15, %c0_16] : memref<4x32xf32, #tpu.memory_space<vmem>>, vector<4x32xf32>
      tpu.vector_store %arg6[%c0_15, %c0_16], %17 {strides = array<i32>} : memref<4x32xf32, #tpu.memory_space<vmem>>, vector<4x32xf32>,
    } else {
    }
    %c0 = arith.constant 0 : index
    %c0_1 = arith.constant 0 : index
    %3 = vector.load %arg2[%c0, %c0_1] : memref<8x32xf32, #tpu.memory_space<vmem>>, vector<8x32xf32>
    %c0_2 = arith.constant 0 : index
    %c0_3 = arith.constant 0 : index
    %4 = vector.load %arg3[%c0_2, %c0_3] : memref<4x32xf32, #tpu.memory_space<vmem>>, vector<4x32xf32>
    %cst = arith.constant dense<0.000000e+00> : vector<8x4xf32>
    %5 = tpu.matmul %3, %4, %cst {dimension_numbers = #tpu.dot_dimension_numbers<[1], [1], [0], [0], [0, 0, 1, 0], [], []>} : vector<8x32xf32>, vector<4x32xf32>, vector<8x4xf32> -> vector<8x4xf32>
    %c0_4 = arith.constant 0 : index
    %c0_5 = arith.constant 0 : index
    %6 = vector.load %arg4[%c0_4, %c0_5] : memref<8x4xf32, #tpu.memory_space<vmem>>, vector<8x4xf32>
    %7 = arith.subf %5, %6 : vector<8x4xf32>
    %cst_6 = arith.constant 6.250000e-02 : f32
    %8 = vector.broadcast %cst_6 : f32 to vector<8x4xf32>
    %9 = arith.mulf %7, %8 : vector<8x4xf32>
    %c0_7 = arith.constant 0 : index
    %c0_8 = arith.constant 0 : index
    %10 = vector.load %arg6[%c0_7, %c0_8] : memref<4x32xf32, #tpu.memory_space<vmem>>, vector<4x32xf32>
    %cst_9 = arith.constant dense<0.000000e+00> : vector<4x32xf32>
    %11 = tpu.matmul %9, %3, %cst_9 {dimension_numbers = #tpu.dot_dimension_numbers<[0], [0], [1], [1], [0, 1, 1, 1], [], []>} : vector<8x4xf32>, vector<8x32xf32>, vector<4x32xf32> -> vector<4x32xf32>
    %12 = arith.addf %10, %11 : vector<4x32xf32>
    %c0_10 = arith.constant 0 : index
    %c0_11 = arith.constant 0 : index
    %13 = vector.load %arg6[%c0_10, %c0_11] : memref<4x32xf32, #tpu.memory_space<vmem>>, vector<4x32xf32>
    tpu.vector_store %arg6[%c0_10, %c0_11], %12 {strides = array<i32>} : memref<4x32xf32, #tpu.memory_space<vmem>>, vector<4x32xf32>,
    %c0_i32_12 = arith.constant 0 : i32
    %14 = arith.cmpi eq, %arg1, %c0_i32_12 : i32
    %15 = arith.extui %14 : i1 to i32
    %c0_i32_13 = arith.constant 0 : i32
    %16 = arith.cmpi ne, %15, %c0_i32_13 : i32
    scf.if %16 {
      %c0_14 = arith.constant 0 : index
      %c0_15 = arith.constant 0 : index
      %17 = vector.load %arg6[%c0_14, %c0_15] : memref<4x32xf32, #tpu.memory_space<vmem>>, vector<4x32xf32>
      %18 = arith.mulf %17, %17 : vector<4x32xf32>
      %19 = vector.shape_cast %18 : vector<4x32xf32> to vector<1x4x32xf32>
      %cst_16 = arith.constant dense<0.000000e+00> : vector<1xf32>
      %20 = vector.multi_reduction <add>, %19, %cst_16 [1, 2] : vector<1x4x32xf32> to vector<1xf32>
      %21 = vector.shape_cast %20 : vector<1xf32> to vector<1x1x1xf32>
      %22 = vector.extract %21[0, 0, 0] : f32 from vector<1x1x1xf32>
      %cst_17 = arith.constant 9.99999974E-5 : f32
      %23 = arith.mulf %cst_17, %22 : f32
      %24 = vector.broadcast %23 : f32 to vector<1x1x128xf32>
      %c0_18 = arith.constant 0 : index
      %c0_19 = arith.constant 0 : index
      %c0_20 = arith.constant 0 : index
      %25 = vector.load %arg5[%c0_18, %c0_19, %c0_20] : memref<1x1x128xf32, #tpu.memory_space<vmem>>, vector<1x1x128xf32>
      tpu.vector_store %arg5[%c0_18, %c0_19, %c0_20], %24 {strides = array<i32>} : memref<1x1x128xf32, #tpu.memory_space<vmem>>, vector<1x1x128xf32>,
    } else {
    }
    return
  }
  func.func @transform_0(%arg0: i32, %arg1: i32) -> (i32, i32) {
    %c0_i32 = arith.constant 0 : i32
    %c0_i32_0 = arith.constant 0 : i32
    return %arg1, %c0_i32 : i32, i32
  }
  func.func @transform_1(%arg0: i32, %arg1: i32) -> (i32, i32) {
    %c0_i32 = arith.constant 0 : i32
    %c0_i32_0 = arith.constant 0 : i32
    return %arg0, %c0_i32 : i32, i32
  }
  func.func @transform_2(%arg0: i32, %arg1: i32) -> (i32, i32) {
    %c0_i32 = arith.constant 0 : i32
    return %arg1, %arg0 : i32, i32
  }
  func.func @transform_3(%arg0: i32, %arg1: i32) -> (i32, i32, i32) {
    %c0_i32 = arith.constant 0 : i32
    %c0_i32_0 = arith.constant 0 : i32
    %c0_i32_1 = arith.constant 0 : i32
    return %arg0, %c0_i32, %c0_i32_0 : i32, i32, i32
  }
}

module attributes {stable_mosaic.version = 11 : i64} {
  func.func @_difficulty_kernel(%arg0: i32, %arg1: i32, %arg2: memref<8x32xf32, #tpu.memory_space<vmem>>, %arg3: memref<4x32xf32, #tpu.memory_space<vmem>>, %arg4: memref<8x4xf32, #tpu.memory_space<vmem>>, %arg5: memref<1x1x128xf32, #tpu.memory_space<vmem>>, %arg6: memref<4x32xf32, #tpu.memory_space<vmem>>) attributes {dimension_semantics = [#tpu.dimension_semantics<parallel>, #tpu.dimension_semantics<arbitrary>], iteration_bounds = array<i64: 1, 1>, scalar_prefetch = 0 : i64, scratch_operands = 1 : i64, tpu.core_type = #tpu.core_type<tc>, window_params = [{transform_indices = @transform_0, window_bounds = array<i64: 8, 32>}, {transform_indices = @transform_1, window_bounds = array<i64: 4, 32>}, {transform_indices = @transform_2, window_bounds = array<i64: 8, 4>}, {transform_indices = @transform_3, window_bounds = array<i64: 1, 1, 128>}]} {
    %c0_i32 = arith.constant 0 : i32
    %0 = arith.cmpi eq, %arg1, %c0_i32 : i32
    %1 = arith.extui %0 : i1 to i32
    %c0_i32_0 = arith.constant 0 : i32
    %2 = arith.cmpi ne, %1, %c0_i32_0 : i32
    scf.if %2 {
      %cst_14 = arith.constant 0.000000e+00 : f32
      %17 = vector.broadcast %cst_14 : f32 to vector<4x32xf32>
      %c0_15 = arith.constant 0 : index
      %c0_16 = arith.constant 0 : index
      %18 = vector.load %arg6[%c0_15, %c0_16] : memref<4x32xf32, #tpu.memory_space<vmem>>, vector<4x32xf32>
      tpu.vector_store %arg6[%c0_15, %c0_16], %17 {strides = array<i32>} : memref<4x32xf32, #tpu.memory_space<vmem>>, vector<4x32xf32>,
    } else {
    }
    %c0 = arith.constant 0 : index
    %c0_1 = arith.constant 0 : index
    %3 = vector.load %arg2[%c0, %c0_1] : memref<8x32xf32, #tpu.memory_space<vmem>>, vector<8x32xf32>
    %c0_2 = arith.constant 0 : index
    %c0_3 = arith.constant 0 : index
    %4 = vector.load %arg3[%c0_2, %c0_3] : memref<4x32xf32, #tpu.memory_space<vmem>>, vector<4x32xf32>
    %cst = arith.constant dense<0.000000e+00> : vector<8x4xf32>
    %5 = tpu.matmul %3, %4, %cst {dimension_numbers = #tpu.dot_dimension_numbers<[1], [1], [0], [0], [0, 0, 1, 0], [], []>} : vector<8x32xf32>, vector<4x32xf32>, vector<8x4xf32> -> vector<8x4xf32>
    %c0_4 = arith.constant 0 : index
    %c0_5 = arith.constant 0 : index
    %6 = vector.load %arg4[%c0_4, %c0_5] : memref<8x4xf32, #tpu.memory_space<vmem>>, vector<8x4xf32>
    %7 = arith.subf %5, %6 : vector<8x4xf32>
    %cst_6 = arith.constant 6.250000e-02 : f32
    %8 = vector.broadcast %cst_6 : f32 to vector<8x4xf32>
    %9 = arith.mulf %7, %8 : vector<8x4xf32>
    %c0_7 = arith.constant 0 : index
    %c0_8 = arith.constant 0 : index
    %10 = vector.load %arg6[%c0_7, %c0_8] : memref<4x32xf32, #tpu.memory_space<vmem>>, vector<4x32xf32>
    %cst_9 = arith.constant dense<0.000000e+00> : vector<4x32xf32>
    %11 = tpu.matmul %9, %3, %cst_9 {dimension_numbers = #tpu.dot_dimension_numbers<[0], [0], [1], [1], [0, 1, 1, 1], [], []>} : vector<8x4xf32>, vector<8x32xf32>, vector<4x32xf32> -> vector<4x32xf32>
    %12 = arith.addf %10, %11 : vector<4x32xf32>
    %c0_10 = arith.constant 0 : index
    %c0_11 = arith.constant 0 : index
    %13 = vector.load %arg6[%c0_10, %c0_11] : memref<4x32xf32, #tpu.memory_space<vmem>>, vector<4x32xf32>
    tpu.vector_store %arg6[%c0_10, %c0_11], %12 {strides = array<i32>} : memref<4x32xf32, #tpu.memory_space<vmem>>, vector<4x32xf32>,
    %c0_i32_12 = arith.constant 0 : i32
    %14 = arith.cmpi eq, %arg1, %c0_i32_12 : i32
    %15 = arith.extui %14 : i1 to i32
    %c0_i32_13 = arith.constant 0 : i32
    %16 = arith.cmpi ne, %15, %c0_i32_13 : i32
    scf.if %16 {
      %c0_14 = arith.constant 0 : index
      %c0_15 = arith.constant 0 : index
      %17 = vector.load %arg6[%c0_14, %c0_15] : memref<4x32xf32, #tpu.memory_space<vmem>>, vector<4x32xf32>
      %18 = arith.mulf %17, %17 : vector<4x32xf32>
      %19 = vector.shape_cast %18 : vector<4x32xf32> to vector<1x4x32xf32>
      %cst_16 = arith.constant dense<0.000000e+00> : vector<1xf32>
      %20 = vector.multi_reduction <add>, %19, %cst_16 [1, 2] : vector<1x4x32xf32> to vector<1xf32>
      %21 = vector.shape_cast %20 : vector<1xf32> to vector<1x1x1xf32>
      %22 = vector.extract %21[0, 0, 0] : f32 from vector<1x1x1xf32>
      %cst_17 = arith.constant 9.99999974E-5 : f32
      %23 = arith.mulf %cst_17, %22 : f32
      %24 = vector.broadcast %23 : f32 to vector<1x1x128xf32>
      %c0_18 = arith.constant 0 : index
      %c0_19 = arith.constant 0 : index
      %c0_20 = arith.constant 0 : index
      %25 = vector.load %arg5[%c0_18, %c0_19, %c0_20] : memref<1x1x128xf32, #tpu.memory_space<vmem>>, vector<1x1x128xf32>
      tpu.vector_store %arg5[%c0_18, %c0_19, %c0_20], %24 {strides = array<i32>} : memref<1x1x128xf32, #tpu.memory_space<vmem>>, vector<1x1x128xf32>,
    } else {
    }
    return
  }
  func.func @transform_0(%arg0: i32, %arg1: i32) -> (i32, i32) {
    %c0_i32 = arith.constant 0 : i32
    %c0_i32_0 = arith.constant 0 : i32
    return %arg1, %c0_i32 : i32, i32
  }
  func.func @transform_1(%arg0: i32, %arg1: i32) -> (i32, i32) {
    %c0_i32 = arith.constant 0 : i32
    %c0_i32_0 = arith.constant 0 : i32
    return %arg0, %c0_i32 : i32, i32
  }
  func.func @transform_2(%arg0: i32, %arg1: i32) -> (i32, i32) {
    %c0_i32 = arith.constant 0 : i32
    return %arg1, %arg0 : i32, i32
  }
  func.func @transform_3(%arg0: i32, %arg1: i32) -> (i32, i32, i32) {
    %c0_i32 = arith.constant 0 : i32
    %c0_i32_0 = arith.constant 0 : i32
    %c0_i32_1 = arith.constant 0 : i32
    return %arg0, %c0_i32, %c0_i32_0 : i32, i32, i32
  }
}

</mosaic_0001>

<bundles_post_ra>
// kernel: tpu_custom_call.1
= control target key start
LH: loop header
LB: loop body
LE: loop exit
PB: predicated region body
PF: predicated region fallthrough
CT: control target
= control target key end

     0   :  { %vm23_vm0 = vcmask 261120   ;;  %v289_v1 = vmov 0.0   ;;  %vm290_vm1 = vmmov 0   ;;  %s324_s0 = inlined_call_operand.vmem [shape: f32[8,32], index: 0, kind: input, shape index: {}]   ;;  %s325_s1 = inlined_call_operand.vmem [shape: f32[4,32], index: 1, kind: input, shape index: {}]   ;;  %s326_s2 = inlined_call_operand.vmem [shape: f32[8,4], index: 2, kind: input, shape index: {}]   ;;  %s327_s3 = inlined_call_operand.hbm [shape: f32[1,1,128], index: 3, kind: output, shape index: {}]  }
   0x1   :  { %v22_v0 = vld [vmem:[%s325_s1] sm:$0xf]  ;;  %252 = vmatprep.subr.mxu0 %v289_v1  ;;  %254 = vmatprep.mubr.msk.f32.mxu0 %vm290_vm1, %v289_v1 }
   0x2   :  { %8 = vsyncpa [#allocation4], 0  ;;  %253 = vmatpush3.xpose.msk.msra.mxu0 %vm23_vm0, %v22_v0  ;;  %v21_v2 = vld [vmem:[%s324_s0] sm:$0xff]  ;;  %257 = vmatprep.subr.mxu1 %v289_v1  ;;  %vm19_vm2 = vcmask 257024   ;;  %vm136_vm3 = vcmask 64512   ;;  %s291_s0 = smov [#allocation3]  }
   0x3   :  { %258 = vmatpush3.msra.mxu1 %v21_v2  ;;  %259 = vmatprep.mubr.msk.f32.mxu1 %vm290_vm1, %v289_v1  ;;  %v100_v3 = vld [vmem:[%s326_s2] sm:$0xff]  ;;  %20 = vst.msk [vmem:[#allocation2] sm:$0xf] %vm19_vm2, %v289_v1  ;;  %s237_s1 = sshll.u32 %s291_s0, 4  ;;  %s238_s1 = int_to_ptr.vmem [resolvable:$true] %s237_s1 }
   0x4   :  { %s267_s19 = scalar_lea.vmem %s238_s1, 16  ;;  %s271_s20 = scalar_lea.vmem %s238_s1, 32 }
   0x5   :  { %255 = vmatmul.mubr.msk.f32.vlgmr.msra.gmra.mxu0 %vm23_vm0, %v21_v2  ;;  %p268_p0 = scmp.ne.s32.totalorder %s238_s1, %s267_s19  ;;  %p272_p1 = scmp.lt.s32.totalorder %s238_s1, %s238_s1 }
   0x6   :  { %p273_p2 = scmp.lt.s32.totalorder %s271_s20, %s267_s19 }
   0x8   :  { %p274_p3 = por %p273_p2, %p272_p1 }
   0xa   :  { %v103_v9 = vld [vmem:[#allocation2] sm:$0xf]  ;;  %p275_p4 = pnand %p274_p3, %p268_p0 }
  0xc5   :  { %v96_v4 = vpop.f32.mrf.mxu0 }
  0xc6   :  { %v101_v5 = vsub.f32 %v96_v4, %v100_v3 }
  0xc7   :  { %v256_v6 = vpop.f32.mrf.mxu0 }
  0xc8   :  { %v102_v7 = vmul.f32 0.0625, %v101_v5 }
  0xca   :  { %104 = vxpose.xlu0.b32.start.end [1/1] (short) (narrow) %v102_v7, 8 }
 0x146   :  { %v120_v8 = vpop.trf.xlu0 }
 0x147   :  { %260 = vmatmul.mubr.msk.f32.vlgmr.msra.gmra.mxu1 %vm136_vm3, %v120_v8 }
 0x207   :  { %v206_v10 = vpop.f32.mrf.mxu1 }
 0x208   :  { %v210_v11 = vadd.f32 %v206_v10, %v103_v9 }
 0x209   :  { %v261_v12 = vpop.f32.mrf.mxu1 }
 0x20a   :  { %212 = vst.msk [vmem:[#allocation2] sm:$0xf] %vm19_vm2, %v210_v11 }
 0x211   :  { %v216_v13 = vld [vmem:[#allocation2] sm:$0xf] }
 0x212   :  { %v217_v14 = vmul.f32 %v216_v13, %v216_v13 }
 0x214   :  { %v218_v15 = vsel %vm19_vm2, %v217_v14, 0.0 }
 0x215   :  { %219 = vadd.xlane.f32.xlu0 %v218_v15 }
 0x29e   :  { %v220_v16 = vpop.xlane.xlu0 %219 }
 0x29f   :  { %v221_v17 = vrot.slane %v220_v16, 4 }
 0x2a1   :  { %v222_v18 = vadd.f32 %v221_v17, %v220_v16 }
 0x2a3   :  { %v223_v19 = vrot.slane %v222_v18, 2 }
 0x2a5   :  { %v224_v20 = vadd.f32 %v223_v19, %v222_v18 }
 0x2a7   :  { %v225_v21 = vrot.slane %v224_v20, 1 }
 0x2a9   :  { %v226_v22 = vadd.f32 %v225_v21, %v224_v20 }
 0x2ab   :  { %262 = vpush %v226_v22 }
 0x2dc   :  { %s263_s2 = spop %262 }
 0x2dd   :  { %s228_s18 = smul.f32 0.0001, %s263_s2 }
 0x2df   :  { %v229_v23 = vstv %s228_s18 }
 0x2e0   :  { %230 = vst [vmem:[#allocation3] sm:$0x1] %v229_v23 }
 0x2e1   :  { %278 = shalt.err (!%p275_p4)
}
 0x2e2   :  { %240 = dma.vmem_to_hbm [thread:$0]  %s238_s1, 16, %s327_s3, [#allocation4]  }
 0x2e3   :  { %287 = dma.done.wait [#allocation4], 16  }
 0x2e4   :  { %288 = vsyncadd [#allocation4], 4294967280 }
 0x2e5   :  { %244 = vsyncpa [#allocation4], 1 }

// kernel: tpu_custom_call.1
= control target key start
LH: loop header
LB: loop body
LE: loop exit
PB: predicated region body
PF: predicated region fallthrough
CT: control target
= control target key end

     0   :  { %vm23_vm0 = vcmask 261120   ;;  %v289_v1 = vmov 0.0   ;;  %vm290_vm1 = vmmov 0   ;;  %s324_s0 = inlined_call_operand.vmem [shape: f32[8,32], index: 0, kind: input, shape index: {}]   ;;  %s325_s1 = inlined_call_operand.vmem [shape: f32[4,32], index: 1, kind: input, shape index: {}]   ;;  %s326_s2 = inlined_call_operand.vmem [shape: f32[8,4], index: 2, kind: input, shape index: {}]   ;;  %s327_s3 = inlined_call_operand.hbm [shape: f32[1,1,128], index: 3, kind: output, shape index: {}]  }
   0x1   :  { %v22_v0 = vld [vmem:[%s325_s1] sm:$0xf]  ;;  %252 = vmatprep.subr.mxu0 %v289_v1  ;;  %254 = vmatprep.mubr.msk.f32.mxu0 %vm290_vm1, %v289_v1 }
   0x2   :  { %8 = vsyncpa [#allocation4], 0  ;;  %253 = vmatpush3.xpose.msk.msra.mxu0 %vm23_vm0, %v22_v0  ;;  %v21_v2 = vld [vmem:[%s324_s0] sm:$0xff]  ;;  %257 = vmatprep.subr.mxu1 %v289_v1  ;;  %vm19_vm2 = vcmask 257024   ;;  %vm136_vm3 = vcmask 64512   ;;  %s291_s0 = smov [#allocation3]  }
   0x3   :  { %258 = vmatpush3.msra.mxu1 %v21_v2  ;;  %259 = vmatprep.mubr.msk.f32.mxu1 %vm290_vm1, %v289_v1  ;;  %v100_v3 = vld [vmem:[%s326_s2] sm:$0xff]  ;;  %20 = vst.msk [vmem:[#allocation2] sm:$0xf] %vm19_vm2, %v289_v1  ;;  %s237_s1 = sshll.u32 %s291_s0, 4  ;;  %s238_s1 = int_to_ptr.vmem [resolvable:$true] %s237_s1 }
   0x4   :  { %s267_s19 = scalar_lea.vmem %s238_s1, 16  ;;  %s271_s20 = scalar_lea.vmem %s238_s1, 32 }
   0x5   :  { %255 = vmatmul.mubr.msk.f32.vlgmr.msra.gmra.mxu0 %vm23_vm0, %v21_v2  ;;  %p268_p0 = scmp.ne.s32.totalorder %s238_s1, %s267_s19  ;;  %p272_p1 = scmp.lt.s32.totalorder %s238_s1, %s238_s1 }
   0x6   :  { %p273_p2 = scmp.lt.s32.totalorder %s271_s20, %s267_s19 }
   0x8   :  { %p274_p3 = por %p273_p2, %p272_p1 }
   0xa   :  { %v103_v9 = vld [vmem:[#allocation2] sm:$0xf]  ;;  %p275_p4 = pnand %p274_p3, %p268_p0 }
  0xc5   :  { %v96_v4 = vpop.f32.mrf.mxu0 }
  0xc6   :  { %v101_v5 = vsub.f32 %v96_v4, %v100_v3 }
  0xc7   :  { %v256_v6 = vpop.f32.mrf.mxu0 }
  0xc8   :  { %v102_v7 = vmul.f32 0.0625, %v101_v5 }
  0xca   :  { %104 = vxpose.xlu0.b32.start.end [1/1] (short) (narrow) %v102_v7, 8 }
 0x146   :  { %v120_v8 = vpop.trf.xlu0 }
 0x147   :  { %260 = vmatmul.mubr.msk.f32.vlgmr.msra.gmra.mxu1 %vm136_vm3, %v120_v8 }
 0x207   :  { %v206_v10 = vpop.f32.mrf.mxu1 }
 0x208   :  { %v210_v11 = vadd.f32 %v206_v10, %v103_v9 }
 0x209   :  { %v261_v12 = vpop.f32.mrf.mxu1 }
 0x20a   :  { %212 = vst.msk [vmem:[#allocation2] sm:$0xf] %vm19_vm2, %v210_v11 }
 0x211   :  { %v216_v13 = vld [vmem:[#allocation2] sm:$0xf] }
 0x212   :  { %v217_v14 = vmul.f32 %v216_v13, %v216_v13 }
 0x214   :  { %v218_v15 = vsel %vm19_vm2, %v217_v14, 0.0 }
 0x215   :  { %219 = vadd.xlane.f32.xlu0 %v218_v15 }
 0x29e   :  { %v220_v16 = vpop.xlane.xlu0 %219 }
 0x29f   :  { %v221_v17 = vrot.slane %v220_v16, 4 }
 0x2a1   :  { %v222_v18 = vadd.f32 %v221_v17, %v220_v16 }
 0x2a3   :  { %v223_v19 = vrot.slane %v222_v18, 2 }
 0x2a5   :  { %v224_v20 = vadd.f32 %v223_v19, %v222_v18 }
 0x2a7   :  { %v225_v21 = vrot.slane %v224_v20, 1 }
 0x2a9   :  { %v226_v22 = vadd.f32 %v225_v21, %v224_v20 }
 0x2ab   :  { %262 = vpush %v226_v22 }
 0x2dc   :  { %s263_s2 = spop %262 }
 0x2dd   :  { %s228_s18 = smul.f32 0.0001, %s263_s2 }
 0x2df   :  { %v229_v23 = vstv %s228_s18 }
 0x2e0   :  { %230 = vst [vmem:[#allocation3] sm:$0x1] %v229_v23 }
 0x2e1   :  { %278 = shalt.err (!%p275_p4)
}
 0x2e2   :  { %240 = dma.vmem_to_hbm [thread:$0]  %s238_s1, 16, %s327_s3, [#allocation4]  }
 0x2e3   :  { %287 = dma.done.wait [#allocation4], 16  }
 0x2e4   :  { %288 = vsyncadd [#allocation4], 4294967280 }
 0x2e5   :  { %244 = vsyncpa [#allocation4], 1 }

</bundles_post_ra>
